<compile_context>
chip_gen: v5e
topology: v5e:2x2
jax: 0.10.0
libtpu: 0.0.40
codegen_flags: <defaults>
</compile_context>

<pallas_src>
import functools
import math

import jax
import jax.numpy as jnp
from jax import lax
from jax.experimental import pallas as pl
from jax.experimental.pallas import tpu as pltpu


def _round_up(x, m):
    return (x + m - 1) // m * m


# --------------------------------------------------------------------------
# Kernel: one grid step == TB recurrent time steps.
# --------------------------------------------------------------------------
def _mdrnn_chunk_kernel(
    x_ref,      # (TB, Bp, XWp)   padded [action | latent] for TB steps
    h0c0_ref,   # (Bp, 2*Hp)      initial [h | c] (padded)
    w_ref,      # (XWp+Hp, 4*Hp)  stacked, gate-padded [W_ih^T ; W_hh^T]
    b_ref,      # (1, 4*Hp)       gate-padded (b_ih + b_hh), f32
    wg_ref,     # (Hp, GOUTp)     padded gmm_linear weight^T
    bg_ref,     # (1, GOUTp)      padded gmm_linear bias, f32
    gmm_ref,    # (TB, Bp, GOUTp) out: [mus | exp(sig) | logpi | r | d | pad]
    hc_ref,     # (Bp, 2*Hp)      out: final [h | c] (padded)
    xh_sc,      # VMEM (Bp, XWp+Hp)  fused matmul input; tail = recurrent h
    c_sc,       # VMEM (Bp, Hp)      recurrent cell state
    *,
    Hp, XWp, TB, stride, n_gauss, T_true, has_tail,
):
    t = pl.program_id(0)
    Bp = gmm_ref.shape[1]
    GOUTp = gmm_ref.shape[2]

    @pl.when(t == 0)
    def _init():
        xh_sc[:, XWp:] = h0c0_ref[:, :Hp]
        c_sc[...] = h0c0_ref[:, Hp:]

    # Step-invariant lane machinery, hoisted out of the inner loop.
    lanes = lax.broadcasted_iota(jnp.int32, (Bp, GOUTp), 1)
    is_sigma = (lanes >= stride) & (lanes < 2 * stride)
    is_pi = (lanes >= 2 * stride) & (lanes < 2 * stride + n_gauss)
    need_exp = is_sigma | is_pi

    def step(s, carry):
        # --- LSTMCell: single fused gate matmul over [x | h] ---
        xh_sc[:, :XWp] = x_ref[s]          # lane-aligned (offset 0)
        gates = (
            jnp.dot(xh_sc[...].astype(w_ref.dtype), w_ref[...],
                    preferred_element_type=jnp.float32)
            + b_ref[...]
        )                                  # (Bp, 4*Hp); gate blocks 128-aligned
        i_g = jax.nn.sigmoid(gates[:, 0 * Hp:1 * Hp])
        f_g = jax.nn.sigmoid(gates[:, 1 * Hp:2 * Hp])
        g_g = jnp.tanh(gates[:, 2 * Hp:3 * Hp])
        o_g = jax.nn.sigmoid(gates[:, 3 * Hp:4 * Hp])

        c_prev = c_sc[...]
        c_next = f_g * c_prev + i_g * g_g
        h_next = o_g * jnp.tanh(c_next)

        # Commit recurrent state.  Time-padding tail steps (global step >=
        # T_true) must NOT advance it, so the final (h, c) stays exact.
        if has_tail:
            valid = (t * TB + s) < T_true
            c_commit = jnp.where(valid, c_next, c_prev)
            h_commit = jnp.where(valid, h_next, xh_sc[:, XWp:])
        else:
            c_commit, h_commit = c_next, h_next
        c_sc[...] = c_commit
        xh_sc[:, XWp:] = h_commit          # h state lives in xh tail

        # --- gmm_linear + GMM head, emitted as one lane-dense slab ---
        out_full = (
            jnp.dot(h_next.astype(wg_ref.dtype), wg_ref[...],
                    preferred_element_type=jnp.float32)
            + bg_ref[...]
        )                                  # (Bp, GOUTp)

        pi_only = jnp.where(is_pi, out_full, -1e30)
        m = jnp.max(pi_only, axis=-1, keepdims=True)
        # Single full-width exp: sigma lanes exact exp(out_full); pi lanes
        # max-shifted (overflow-safe); all other lanes see exp(0) (unused).
        e = jnp.exp(jnp.where(need_exp,
                              out_full - jnp.where(is_pi, m, 0.0), 0.0))
        denom = jnp.sum(jnp.where(is_pi, e, 0.0), axis=-1, keepdims=True)
        lse = m + jnp.log(denom)

        res = jnp.where(is_sigma, e, out_full)       # exp(sigma) lanes
        res = jnp.where(is_pi, out_full - lse, res)  # logpi lanes
        gmm_ref[s] = res                             # mus / r / d pass through
        return carry

    lax.fori_loop(0, TB, step, 0, unroll=True)

    @pl.when(t == pl.num_programs(0) - 1)
    def _finalize():
        hc_ref[:, :Hp] = xh_sc[:, XWp:]
        hc_ref[:, Hp:] = c_sc[...]


# --------------------------------------------------------------------------
# One-time parameter preprocessing (hoisted out of the forward pass).
# --------------------------------------------------------------------------
def prepare_mdrnn_params(params, *, latents, actions, hiddens, gaussians,
                         weight_dtype=jnp.bfloat16):
    """Transpose / stack / pad / cast the MDRNN weights once.

    weight_dtype=bfloat16 (default) halves resident weight VMEM and cuts MXU
    passes ~3x on v6e/v7x; accumulation stays f32.  Pass float32 for bit-tight
    parity with an f32 reference.
    """
    H = hiddens
    XW = latents + actions
    Hp = _round_up(H, 128)
    XWp = _round_up(XW, 128)
    GOUT = (2 * latents + 1) * gaussians + 2
    GOUTp = _round_up(GOUT, 128)

    def pad_gates(w_t):                   # (rows, 4H) -> (rows, 4*Hp)
        r = w_t.shape[0]
        w4 = w_t.reshape(r, 4, H)
        w4 = jnp.pad(w4, ((0, 0), (0, 0), (0, Hp - H)))
        return w4.reshape(r, 4 * Hp)

    # NOTE: for H=64, 4*H=256 is already a 128-multiple; dropping the per-gate
    # padding would halve the gate matmul's N at the cost of a pltpu.roll
    # realignment.  Only worth it if profiling shows the MXU (not per-step
    # overhead) binds after chunking -- not adopted here.
    w_ih_g = pad_gates(params["w_ih"].T.astype(jnp.float32))   # (XW, 4Hp)
    w_hh_g = pad_gates(params["w_hh"].T.astype(jnp.float32))   # (H, 4Hp)
    w_lstm = jnp.zeros((XWp + Hp, 4 * Hp), jnp.float32)
    w_lstm = w_lstm.at[:XW].set(w_ih_g)
    w_lstm = w_lstm.at[XWp:XWp + H].set(w_hh_g)
    b_lstm = pad_gates(
        (params["b_ih"] + params["b_hh"]).astype(jnp.float32)[None, :])

    w_gmm = jnp.pad(params["w_gmm"].T.astype(jnp.float32),
                    ((0, Hp - H), (0, GOUTp - GOUT)))
    b_gmm = jnp.pad(params["b_gmm"].astype(jnp.float32)[None, :],
                    ((0, 0), (0, GOUTp - GOUT)))

    dims = dict(latents=latents, actions=actions, hiddens=hiddens,
                gaussians=gaussians, H=H, Hp=Hp, XW=XW, XWp=XWp,
                GOUT=GOUT, GOUTp=GOUTp, stride=gaussians * latents)
    return dict(w_lstm=w_lstm.astype(weight_dtype),
                b_lstm=b_lstm,                       # biases stay f32
                w_gmm=w_gmm.astype(weight_dtype),
                b_gmm=b_gmm,
                dims=dims)


# --------------------------------------------------------------------------
# Fused multi-step rollout (ceil(T/TB) grid steps in ONE pallas_call).
# --------------------------------------------------------------------------
def mdrnn_rollout(actions_seq, latents_seq, hidden, prep, *, time_block=16):
    """actions_seq: (T,B,A), latents_seq: (T,B,L), hidden: ((B,H),(B,H)).

    Returns per-step (mus, sigmas, logpi, r, d) and the final (h, c).
    """
    d = prep["dims"]
    H, Hp, XW, XWp = d["H"], d["Hp"], d["XW"], d["XWp"]
    GOUTp = d["GOUTp"]
    G, L, stride = d["gaussians"], d["latents"], d["stride"]

    h0, c0 = hidden
    T, B = actions_seq.shape[0], actions_seq.shape[1]
    TB = min(time_block, T)
    n_chunks = pl.cdiv(T, TB)
    T_pad = n_chunks * TB
    Bp = max(8, _round_up(B, 8))          # f32 sublane tile

    x_seq = jnp.concatenate([actions_seq, latents_seq], axis=-1)
    x_seq = jnp.pad(x_seq.astype(jnp.float32),
                    ((0, T_pad - T), (0, Bp - B), (0, XWp - XW)))
    h0c0 = jnp.concatenate(
        [jnp.pad(h0.astype(jnp.float32), ((0, Bp - B), (0, Hp - H))),
         jnp.pad(c0.astype(jnp.float32), ((0, Bp - B), (0, Hp - H)))], axis=-1)

    kernel = functools.partial(
        _mdrnn_chunk_kernel, Hp=Hp, XWp=XWp, TB=TB, stride=stride,
        n_gauss=G, T_true=T, has_tail=(T_pad != T))

    const = lambda shape: pl.BlockSpec(shape, lambda t: (0,) * len(shape))

    gmm_seq, hc = pl.pallas_call(
        kernel,
        out_shape=(
            jax.ShapeDtypeStruct((T_pad, Bp, GOUTp), jnp.float32),
            jax.ShapeDtypeStruct((Bp, 2 * Hp), jnp.float32),
        ),
        grid=(n_chunks,),
        in_specs=[
            pl.BlockSpec((TB, Bp, XWp), lambda t: (t, 0, 0)),   # TB-step x chunk
            const((Bp, 2 * Hp)),                                # h0c0
            const((XWp + Hp, 4 * Hp)),                          # stacked LSTM W
            const((1, 4 * Hp)),                                 # LSTM bias
            const((Hp, GOUTp)),                                 # GMM W
            const((1, GOUTp)),                                  # GMM bias
        ],
        out_specs=(
            pl.BlockSpec((TB, Bp, GOUTp), lambda t: (t, 0, 0)),
            const((Bp, 2 * Hp)),
        ),
        scratch_shapes=[
            pltpu.VMEM((Bp, XWp + Hp), jnp.float32),   # [x | h]; tail = h state
            pltpu.VMEM((Bp, Hp), jnp.float32),         # c state
        ],
        compiler_params=pltpu.CompilerParams(
            dimension_semantics=("arbitrary",)),       # recurrent axis
    )(x_seq, h0c0, prep["w_lstm"], prep["b_lstm"],
      prep["w_gmm"], prep["b_gmm"])

    gmm_seq = gmm_seq[:T, :B]
    mus = gmm_seq[:, :, :stride].reshape(T, B, G, L)
    sigmas = gmm_seq[:, :, stride:2 * stride].reshape(T, B, G, L)
    logpi = gmm_seq[:, :, 2 * stride:2 * stride + G]
    r = gmm_seq[:, :, 2 * stride + G]
    dterm = gmm_seq[:, :, 2 * stride + G + 1]
    h_n = hc[:B, :H]
    c_n = hc[:B, Hp:Hp + H]
    return mus, sigmas, logpi, r, dterm, (h_n, c_n)


def mdrnn_cell_forward(action, latent, hidden, prep):
    """ONE STEP forward — matches MDRNNCell.forward semantics."""
    mus, sigmas, logpi, r, dterm, hc = mdrnn_rollout(
        action[None], latent[None], hidden, prep)
    return mus[0], sigmas[0], logpi[0], r[0], dterm[0], hc


# --------------------------------------------------------------------------
# Pure-JAX reference mirroring the PyTorch module.
# --------------------------------------------------------------------------
def _reference_forward(action, latent, hidden, params, *, latents, gaussians):
    h, c = hidden
    x = jnp.concatenate([action, latent], axis=1)
    gates = (x @ params["w_ih"].T + params["b_ih"]
             + h @ params["w_hh"].T + params["b_hh"])
    H = h.shape[1]
    i = jax.nn.sigmoid(gates[:, :H])
    f = jax.nn.sigmoid(gates[:, H:2 * H])
    g = jnp.tanh(gates[:, 2 * H:3 * H])
    o = jax.nn.sigmoid(gates[:, 3 * H:])
    c_next = f * c + i * g
    h_next = o * jnp.tanh(c_next)
    out_full = h_next @ params["w_gmm"].T + params["b_gmm"]
    stride = gaussians * latents
    mus = out_full[:, :stride].reshape(-1, gaussians, latents)
    sigmas = jnp.exp(out_full[:, stride:2 * stride]).reshape(-1, gaussians, latents)
    pi = out_full[:, 2 * stride:2 * stride + gaussians]
    logpi = jax.nn.log_softmax(pi, axis=-1)
    return mus, sigmas, logpi, out_full[:, -2], out_full[:, -1], (h_next, c_next)


if __name__ == "__main__":
    # Small, deterministic configuration.
    BSIZE, LSIZE, ASIZE, RSIZE, NGAUSS = 2, 32, 3, 64, 5
    GOUT = (2 * LSIZE + 1) * NGAUSS + 2

    key = jax.random.PRNGKey(0)
    ks = jax.random.split(key, 12)
    k_lstm = 1.0 / math.sqrt(RSIZE)
    k_lin = 1.0 / math.sqrt(RSIZE)

    params = {
        "w_ih": jax.random.uniform(ks[0], (4 * RSIZE, LSIZE + ASIZE),
                                   minval=-k_lstm, maxval=k_lstm, dtype=jnp.float32),
        "w_hh": jax.random.uniform(ks[1], (4 * RSIZE, RSIZE),
                                   minval=-k_lstm, maxval=k_lstm, dtype=jnp.float32),
        "b_ih": jax.random.uniform(ks[2], (4 * RSIZE,),
                                   minval=-k_lstm, maxval=k_lstm, dtype=jnp.float32),
        "b_hh": jax.random.uniform(ks[3], (4 * RSIZE,),
                                   minval=-k_lstm, maxval=k_lstm, dtype=jnp.float32),
        "w_gmm": jax.random.uniform(ks[4], (GOUT, RSIZE),
                                    minval=-k_lin, maxval=k_lin, dtype=jnp.float32),
        "b_gmm": jax.random.uniform(ks[5], (GOUT,),
                                    minval=-k_lin, maxval=k_lin, dtype=jnp.float32),
    }

    # One-time (hoisted) weight preprocessing: f32 for tight correctness
    # checks, bf16 for the recommended v6e/v7x fast path.
    prep_f32 = prepare_mdrnn_params(params, latents=LSIZE, actions=ASIZE,
                                    hiddens=RSIZE, gaussians=NGAUSS,
                                    weight_dtype=jnp.float32)
    prep_bf16 = prepare_mdrnn_params(params, latents=LSIZE, actions=ASIZE,
                                     hiddens=RSIZE, gaussians=NGAUSS,
                                     weight_dtype=jnp.bfloat16)

    action = jax.random.normal(ks[6], (BSIZE, ASIZE), dtype=jnp.float32)
    latent = jax.random.normal(ks[7], (BSIZE, LSIZE), dtype=jnp.float32)
    h0 = jax.random.normal(ks[8], (BSIZE, RSIZE), dtype=jnp.float32)
    c0 = jax.random.normal(ks[9], (BSIZE, RSIZE), dtype=jnp.float32)

    # ---- single step (module semantics), f32 weights: tight check ----
    out = jax.block_until_ready(
        mdrnn_cell_forward(action, latent, (h0, c0), prep_f32))
    ref = _reference_forward(action, latent, (h0, c0), params,
                             latents=LSIZE, gaussians=NGAUSS)
    mus, sigmas, logpi, r, d, (hn, cn) = out
    rmus, rsig, rlogpi, rr, rd, (rhn, rcn) = ref
    for a, b in [(mus, rmus), (sigmas, rsig), (logpi, rlogpi),
                 (r, rr), (d, rd), (hn, rhn), (cn, rcn)]:
        assert a.shape == b.shape, (a.shape, b.shape)
        assert jnp.allclose(a, b, atol=3e-4, rtol=3e-4), \
            float(jnp.max(jnp.abs(a - b)))

    # ---- chunked multi-step rollout (T not a multiple of the time block) ----
    T = 10
    act_seq = jax.random.normal(ks[10], (T, BSIZE, ASIZE), dtype=jnp.float32)
    lat_seq = jax.random.normal(ks[11], (T, BSIZE, LSIZE), dtype=jnp.float32)
    roll = jax.block_until_ready(
        mdrnn_rollout(act_seq, lat_seq, (h0, c0), prep_f32, time_block=4))
    rmus_s, rsig_s, rlogpi_s, rr_s, rd_s = [], [], [], [], []
    hh, cc = h0, c0
    for t in range(T):
        m_, s_, lp_, r_, d_, (hh, cc) = _reference_forward(
            act_seq[t], lat_seq[t], (hh, cc), params,
            latents=LSIZE, gaussians=NGAUSS)
        rmus_s.append(m_); rsig_s.append(s_); rlogpi_s.append(lp_)
        rr_s.append(r_); rd_s.append(d_)
    ref_roll = (jnp.stack(rmus_s), jnp.stack(rsig_s), jnp.stack(rlogpi_s),
                jnp.stack(rr_s), jnp.stack(rd_s), (hh, cc))
    for a, b in [(roll[0], ref_roll[0]), (roll[1], ref_roll[1]),
                 (roll[2], ref_roll[2]), (roll[3], ref_roll[3]),
                 (roll[4], ref_roll[4]),
                 (roll[5][0], ref_roll[5][0]), (roll[5][1], ref_roll[5][1])]:
        assert a.shape == b.shape, (a.shape, b.shape)
        assert jnp.allclose(a, b, atol=1e-3, rtol=1e-3), \
            float(jnp.max(jnp.abs(a - b)))

    # ---- bf16 weight path (v6e/v7x fast path): loose sanity check ----
    out_bf = jax.block_until_ready(
        mdrnn_cell_forward(action, latent, (h0, c0), prep_bf16))
    bmus, bsig, blogpi, br, bd, (bhn, bcn) = out_bf
    for a, b in [(bmus, rmus), (bsig, rsig), (blogpi, rlogpi),
                 (br, rr), (bd, rd), (bhn, rhn), (bcn, rcn)]:
        assert a.shape == b.shape, (a.shape, b.shape)
        assert jnp.allclose(a, b, atol=1e-1, rtol=1e-1), \
            float(jnp.max(jnp.abs(a - b)))

    print("KERNEL_OK")
</pallas_src>

<mosaic_0001>
module attributes {stable_mosaic.version = 11 : i64} {
  func.func @_mdrnn_chunk_kernel(%arg0: i32, %arg1: memref<1x8x128xf32, #tpu.memory_space<vmem>>, %arg2: memref<8x256xf32, #tpu.memory_space<vmem>>, %arg3: memref<256x512xf32, #tpu.memory_space<vmem>>, %arg4: memref<1x512xf32, #tpu.memory_space<vmem>>, %arg5: memref<128x384xf32, #tpu.memory_space<vmem>>, %arg6: memref<1x384xf32, #tpu.memory_space<vmem>>, %arg7: memref<1x8x384xf32, #tpu.memory_space<vmem>>, %arg8: memref<8x256xf32, #tpu.memory_space<vmem>>, %arg9: memref<8x256xf32, #tpu.memory_space<vmem>>, %arg10: memref<8x128xf32, #tpu.memory_space<vmem>>) attributes {dimension_semantics = [#tpu.dimension_semantics<arbitrary>], iteration_bounds = array<i64: 1>, scalar_prefetch = 0 : i64, scratch_operands = 2 : i64, tpu.core_type = #tpu.core_type<tc>, window_params = [{transform_indices = @transform_0, window_bounds = array<i64: 1, 8, 128>}, {pipeline_mode = #tpu.pipeline_mode<synchronous>, transform_indices = @transform_1, window_bounds = array<i64: 8, 256>}, {pipeline_mode = #tpu.pipeline_mode<synchronous>, transform_indices = @transform_2, window_bounds = array<i64: 256, 512>}, {pipeline_mode = #tpu.pipeline_mode<synchronous>, transform_indices = @transform_3, window_bounds = array<i64: 1, 512>}, {pipeline_mode = #tpu.pipeline_mode<synchronous>, transform_indices = @transform_4, window_bounds = array<i64: 128, 384>}, {pipeline_mode = #tpu.pipeline_mode<synchronous>, transform_indices = @transform_5, window_bounds = array<i64: 1, 384>}, {transform_indices = @transform_6, window_bounds = array<i64: 1, 8, 384>}, {pipeline_mode = #tpu.pipeline_mode<synchronous>, transform_indices = @transform_7, window_bounds = array<i64: 8, 256>}]} {
    %c0_i32 = arith.constant 0 : i32
    %0 = arith.cmpi eq, %arg0, %c0_i32 : i32
    %1 = arith.extui %0 : i1 to i32
    %c0_i32_0 = arith.constant 0 : i32
    %2 = arith.cmpi ne, %1, %c0_i32_0 : i32
    scf.if %2 {
      %c0_35 = arith.constant 0 : index
      %c0_36 = arith.constant 0 : index
      %87 = vector.load %arg2[%c0_35, %c0_36] : memref<8x256xf32, #tpu.memory_space<vmem>>, vector<8x128xf32>
      %c0_37 = arith.constant 0 : index
      %c128_38 = arith.constant 128 : index
      %88 = vector.load %arg9[%c0_37, %c128_38] : memref<8x256xf32, #tpu.memory_space<vmem>>, vector<8x128xf32>
      tpu.vector_store %arg9[%c0_37, %c128_38], %87 {strides = array<i32>} : memref<8x256xf32, #tpu.memory_space<vmem>>, vector<8x128xf32>,
      %c0_39 = arith.constant 0 : index
      %c128_40 = arith.constant 128 : index
      %89 = vector.load %arg2[%c0_39, %c128_40] : memref<8x256xf32, #tpu.memory_space<vmem>>, vector<8x128xf32>
      %c0_41 = arith.constant 0 : index
      %c0_42 = arith.constant 0 : index
      %90 = vector.load %arg10[%c0_41, %c0_42] : memref<8x128xf32, #tpu.memory_space<vmem>>, vector<8x128xf32>
      tpu.vector_store %arg10[%c0_41, %c0_42], %89 {strides = array<i32>} : memref<8x128xf32, #tpu.memory_space<vmem>>, vector<8x128xf32>,
    } else {
    }
    %3 = tpu.iota {dimensions = array<i32: 1>} : vector<8x384xi32>
    %c160_i32 = arith.constant 160 : i32
    %4 = vector.broadcast %c160_i32 : i32 to vector<8x384xi32>
    %5 = arith.cmpi sge, %3, %4 : vector<8x384xi32>
    %c320_i32 = arith.constant 320 : i32
    %6 = vector.broadcast %c320_i32 : i32 to vector<8x384xi32>
    %7 = arith.cmpi slt, %3, %6 : vector<8x384xi32>
    %8 = arith.andi %5, %7 : vector<8x384xi1>
    %c320_i32_1 = arith.constant 320 : i32
    %9 = vector.broadcast %c320_i32_1 : i32 to vector<8x384xi32>
    %10 = arith.cmpi sge, %3, %9 : vector<8x384xi32>
    %c325_i32 = arith.constant 325 : i32
    %11 = vector.broadcast %c325_i32 : i32 to vector<8x384xi32>
    %12 = arith.cmpi slt, %3, %11 : vector<8x384xi32>
    %13 = arith.andi %10, %12 : vector<8x384xi1>
    %14 = arith.ori %8, %13 : vector<8x384xi1>
    %c0_i32_2 = arith.constant 0 : i32
    %15 = arith.index_cast %c0_i32_2 : i32 to index
    %c0 = arith.constant 0 : index
    %c0_3 = arith.constant 0 : index
    %16 = vector.load %arg1[%15, %c0, %c0_3] : memref<1x8x128xf32, #tpu.memory_space<vmem>>, vector<1x8x128xf32>
    %17 = vector.shape_cast %16 : vector<1x8x128xf32> to vector<8x128xf32>
    %c0_4 = arith.constant 0 : index
    %c0_5 = arith.constant 0 : index
    %18 = vector.load %arg9[%c0_4, %c0_5] : memref<8x256xf32, #tpu.memory_space<vmem>>, vector<8x128xf32>
    tpu.vector_store %arg9[%c0_4, %c0_5], %17 {strides = array<i32>} : memref<8x256xf32, #tpu.memory_space<vmem>>, vector<8x128xf32>,
    %c0_6 = arith.constant 0 : index
    %c0_7 = arith.constant 0 : index
    %19 = vector.load %arg9[%c0_6, %c0_7] : memref<8x256xf32, #tpu.memory_space<vmem>>, vector<8x256xf32>
    %c0_8 = arith.constant 0 : index
    %c0_9 = arith.constant 0 : index
    %20 = vector.load %arg3[%c0_8, %c0_9] : memref<256x512xf32, #tpu.memory_space<vmem>>, vector<256x512xf32>
    %cst = arith.constant dense<0.000000e+00> : vector<8x512xf32>
    %21 = tpu.matmul %19, %20, %cst {dimension_numbers = #tpu.dot_dimension_numbers<[1], [0], [0], [1], [0, 0, 1, 1], [], []>} : vector<8x256xf32>, vector<256x512xf32>, vector<8x512xf32> -> vector<8x512xf32>
    %c0_10 = arith.constant 0 : index
    %c0_11 = arith.constant 0 : index
    %22 = vector.load %arg4[%c0_10, %c0_11] : memref<1x512xf32, #tpu.memory_space<vmem>>, vector<1x512xf32>
    %23 = vector.broadcast %22 : vector<1x512xf32> to vector<8x512xf32>
    %24 = arith.addf %21, %23 : vector<8x512xf32>
    %25 = vector.extract_strided_slice %24 {offsets = [0, 0], sizes = [8, 128], strides = [1, 1]} : vector<8x512xf32> to vector<8x128xf32>
    %26 = arith.negf %25 : vector<8x128xf32>
    %27 = math.exp %26 : vector<8x128xf32>
    %cst_12 = arith.constant 1.000000e+00 : f32
    %28 = vector.broadcast %cst_12 : f32 to vector<8x128xf32>
    %29 = arith.addf %28, %27 : vector<8x128xf32>
    %30 = arith.divf %28, %29 : vector<8x128xf32>
    %31 = vector.extract_strided_slice %24 {offsets = [0, 128], sizes = [8, 128], strides = [1, 1]} : vector<8x512xf32> to vector<8x128xf32>
    %32 = arith.negf %31 : vector<8x128xf32>
    %33 = math.exp %32 : vector<8x128xf32>
    %cst_13 = arith.constant 1.000000e+00 : f32
    %34 = vector.broadcast %cst_13 : f32 to vector<8x128xf32>
    %35 = arith.addf %34, %33 : vector<8x128xf32>
    %36 = arith.divf %34, %35 : vector<8x128xf32>
    %37 = vector.extract_strided_slice %24 {offsets = [0, 256], sizes = [8, 128], strides = [1, 1]} : vector<8x512xf32> to vector<8x128xf32>
    %38 = math.tanh %37 : vector<8x128xf32>
    %39 = vector.extract_strided_slice %24 {offsets = [0, 384], sizes = [8, 128], strides = [1, 1]} : vector<8x512xf32> to vector<8x128xf32>
    %40 = arith.negf %39 : vector<8x128xf32>
    %41 = math.exp %40 : vector<8x128xf32>
    %cst_14 = arith.constant 1.000000e+00 : f32
    %42 = vector.broadcast %cst_14 : f32 to vector<8x128xf32>
    %43 = arith.addf %42, %41 : vector<8x128xf32>
    %44 = arith.divf %42, %43 : vector<8x128xf32>
    %c0_15 = arith.constant 0 : index
    %c0_16 = arith.constant 0 : index
    %45 = vector.load %arg10[%c0_15, %c0_16] : memref<8x128xf32, #tpu.memory_space<vmem>>, vector<8x128xf32>
    %46 = arith.mulf %36, %45 : vector<8x128xf32>
    %47 = arith.mulf %30, %38 : vector<8x128xf32>
    %48 = arith.addf %46, %47 : vector<8x128xf32>
    %49 = math.tanh %48 : vector<8x128xf32>
    %50 = arith.mulf %44, %49 : vector<8x128xf32>
    %c0_17 = arith.constant 0 : index
    %c0_18 = arith.constant 0 : index
    %51 = vector.load %arg10[%c0_17, %c0_18] : memref<8x128xf32, #tpu.memory_space<vmem>>, vector<8x128xf32>
    tpu.vector_store %arg10[%c0_17, %c0_18], %48 {strides = array<i32>} : memref<8x128xf32, #tpu.memory_space<vmem>>, vector<8x128xf32>,
    %c0_19 = arith.constant 0 : index
    %c128 = arith.constant 128 : index
    %52 = vector.load %arg9[%c0_19, %c128] : memref<8x256xf32, #tpu.memory_space<vmem>>, vector<8x128xf32>
    tpu.vector_store %arg9[%c0_19, %c128], %50 {strides = array<i32>} : memref<8x256xf32, #tpu.memory_space<vmem>>, vector<8x128xf32>,
    %c0_20 = arith.constant 0 : index
    %c0_21 = arith.constant 0 : index
    %53 = vector.load %arg5[%c0_20, %c0_21] : memref<128x384xf32, #tpu.memory_space<vmem>>, vector<128x384xf32>
    %cst_22 = arith.constant dense<0.000000e+00> : vector<8x384xf32>
    %54 = tpu.matmul %50, %53, %cst_22 {dimension_numbers = #tpu.dot_dimension_numbers<[1], [0], [0], [1], [0, 0, 1, 1], [], []>} : vector<8x128xf32>, vector<128x384xf32>, vector<8x384xf32> -> vector<8x384xf32>
    %c0_23 = arith.constant 0 : index
    %c0_24 = arith.constant 0 : index
    %55 = vector.load %arg6[%c0_23, %c0_24] : memref<1x384xf32, #tpu.memory_space<vmem>>, vector<1x384xf32>
    %56 = vector.broadcast %55 : vector<1x384xf32> to vector<8x384xf32>
    %57 = arith.addf %54, %56 : vector<8x384xf32>
    %cst_25 = arith.constant -1.000000e+30 : f32
    %58 = vector.broadcast %cst_25 : f32 to vector<8x384xf32>
    %59 = arith.select %13, %57, %58 : vector<8x384xi1>, vector<8x384xf32>
    %cst_26 = arith.constant dense<0xFF800000> : vector<8xf32>
    %60 = vector.multi_reduction <maximumf>, %59, %cst_26 [1] : vector<8x384xf32> to vector<8xf32>
    %61 = vector.shape_cast %60 : vector<8xf32> to vector<8x1xf32>
    %cst_27 = arith.constant 0.000000e+00 : f32
    %62 = vector.shape_cast %61 : vector<8x1xf32> to vector<8x1xf32>
    %63 = vector.broadcast %62 : vector<8x1xf32> to vector<8x384xf32>
    %64 = vector.broadcast %cst_27 : f32 to vector<8x384xf32>
    %65 = arith.select %13, %63, %64 : vector<8x384xi1>, vector<8x384xf32>
    %66 = arith.subf %57, %65 : vector<8x384xf32>
    %cst_28 = arith.constant 0.000000e+00 : f32
    %67 = vector.broadcast %cst_28 : f32 to vector<8x384xf32>
    %68 = arith.select %14, %66, %67 : vector<8x384xi1>, vector<8x384xf32>
    %69 = math.exp %68 : vector<8x384xf32>
    %cst_29 = arith.constant 0.000000e+00 : f32
    %70 = vector.broadcast %cst_29 : f32 to vector<8x384xf32>
    %71 = arith.select %13, %69, %70 : vector<8x384xi1>, vector<8x384xf32>
    %cst_30 = arith.constant dense<0.000000e+00> : vector<8xf32>
    %72 = vector.multi_reduction <add>, %71, %cst_30 [1] : vector<8x384xf32> to vector<8xf32>
    %73 = vector.shape_cast %72 : vector<8xf32> to vector<8x1xf32>
    %74 = math.log %73 : vector<8x1xf32>
    %75 = arith.addf %61, %74 : vector<8x1xf32>
    %76 = arith.select %8, %69, %57 : vector<8x384xi1>, vector<8x384xf32>
    %77 = vector.broadcast %75 : vector<8x1xf32> to vector<8x384xf32>
    %78 = arith.subf %57, %77 : vector<8x384xf32>
    %79 = arith.select %13, %78, %76 : vector<8x384xi1>, vector<8x384xf32>
    %80 = arith.index_cast %c0_i32_2 : i32 to index
    %c0_31 = arith.constant 0 : index
    %c0_32 = arith.constant 0 : index
    %81 = vector.load %arg7[%80, %c0_31, %c0_32] : memref<1x8x384xf32, #tpu.memory_space<vmem>>, vector<1x8x384xf32>
    %82 = vector.shape_cast %81 : vector<1x8x384xf32> to vector<8x384xf32>
    %83 = vector.shape_cast %79 : vector<8x384xf32> to vector<1x8x384xf32>
    tpu.vector_store %arg7[%80, %c0_31, %c0_32], %83 {strides = array<i32>} : memref<1x8x384xf32, #tpu.memory_space<vmem>>, vector<1x8x384xf32>,
    %c1_i32 = arith.constant 1 : i32
    %c0_i32_33 = arith.constant 0 : i32
    %84 = arith.cmpi eq, %arg0, %c0_i32_33 : i32
    %85 = arith.extui %84 : i1 to i32
    %c0_i32_34 = arith.constant 0 : i32
    %86 = arith.cmpi ne, %85, %c0_i32_34 : i32
    scf.if %86 {
      %c0_35 = arith.constant 0 : index
      %c128_36 = arith.constant 128 : index
      %87 = vector.load %arg9[%c0_35, %c128_36] : memref<8x256xf32, #tpu.memory_space<vmem>>, vector<8x128xf32>
      %c0_37 = arith.constant 0 : index
      %c0_38 = arith.constant 0 : index
      %88 = vector.load %arg8[%c0_37, %c0_38] : memref<8x256xf32, #tpu.memory_space<vmem>>, vector<8x128xf32>
      tpu.vector_store %arg8[%c0_37, %c0_38], %87 {strides = array<i32>} : memref<8x256xf32, #tpu.memory_space<vmem>>, vector<8x128xf32>,
      %c0_39 = arith.constant 0 : index
      %c0_40 = arith.constant 0 : index
      %89 = vector.load %arg10[%c0_39, %c0_40] : memref<8x128xf32, #tpu.memory_space<vmem>>, vector<8x128xf32>
      %c0_41 = arith.constant 0 : index
      %c128_42 = arith.constant 128 : index
      %90 = vector.load %arg8[%c0_41, %c128_42] : memref<8x256xf32, #tpu.memory_space<vmem>>, vector<8x128xf32>
      tpu.vector_store %arg8[%c0_41, %c128_42], %89 {strides = array<i32>} : memref<8x256xf32, #tpu.memory_space<vmem>>, vector<8x128xf32>,
    } else {
    }
    return
  }
  func.func @transform_0(%arg0: i32) -> (i32, i32, i32) {
    %c0_i32 = arith.constant 0 : i32
    %c0_i32_0 = arith.constant 0 : i32
    %c0_i32_1 = arith.constant 0 : i32
    return %arg0, %c0_i32, %c0_i32_0 : i32, i32, i32
  }
  func.func @transform_1(%arg0: i32) -> (i32, i32) {
    %c0_i32 = arith.constant 0 : i32
    %c0_i32_0 = arith.constant 0 : i32
    %c0_i32_1 = arith.constant 0 : i32
    return %c0_i32, %c0_i32_0 : i32, i32
  }
  func.func @transform_2(%arg0: i32) -> (i32, i32) {
    %c0_i32 = arith.constant 0 : i32
    %c0_i32_0 = arith.constant 0 : i32
    %c0_i32_1 = arith.constant 0 : i32
    return %c0_i32, %c0_i32_0 : i32, i32
  }
  func.func @transform_3(%arg0: i32) -> (i32, i32) {
    %c0_i32 = arith.constant 0 : i32
    %c0_i32_0 = arith.constant 0 : i32
    %c0_i32_1 = arith.constant 0 : i32
    return %c0_i32, %c0_i32_0 : i32, i32
  }
  func.func @transform_4(%arg0: i32) -> (i32, i32) {
    %c0_i32 = arith.constant 0 : i32
    %c0_i32_0 = arith.constant 0 : i32
    %c0_i32_1 = arith.constant 0 : i32
    return %c0_i32, %c0_i32_0 : i32, i32
  }
  func.func @transform_5(%arg0: i32) -> (i32, i32) {
    %c0_i32 = arith.constant 0 : i32
    %c0_i32_0 = arith.constant 0 : i32
    %c0_i32_1 = arith.constant 0 : i32
    return %c0_i32, %c0_i32_0 : i32, i32
  }
  func.func @transform_6(%arg0: i32) -> (i32, i32, i32) {
    %c0_i32 = arith.constant 0 : i32
    %c0_i32_0 = arith.constant 0 : i32
    %c0_i32_1 = arith.constant 0 : i32
    return %arg0, %c0_i32, %c0_i32_0 : i32, i32, i32
  }
  func.func @transform_7(%arg0: i32) -> (i32, i32) {
    %c0_i32 = arith.constant 0 : i32
    %c0_i32_0 = arith.constant 0 : i32
    %c0_i32_1 = arith.constant 0 : i32
    return %c0_i32, %c0_i32_0 : i32, i32
  }
}

</mosaic_0001>

<bundles_post_ra>
// kernel: tpu_custom_call.1
= control target key start
LH: loop header
LB: loop body
LE: loop exit
PB: predicated region body
PF: predicated region fallthrough
CT: control target
= control target key end

     0   :  { %13 = vsyncpa [#allocation5], 0  ;;  %s1053_s0 = inlined_call_operand.hbm [shape: f32[1,8,128], index: 0, kind: input, shape index: {}]   ;;  %s1054_s1 = inlined_call_operand.hbm [shape: f32[8,256], index: 1, kind: input, shape index: {}]   ;;  %s1055_s2 = inlined_call_operand.hbm [shape: f32[256,512], index: 2, kind: input, shape index: {}]   ;;  %s1056_s3 = inlined_call_operand.hbm [shape: f32[1,512], index: 3, kind: input, shape index: {}]   ;;  %s1057_s4 = inlined_call_operand.hbm [shape: f32[128,384], index: 4, kind: input, shape index: {}]   ;;  %s1058_s5 = inlined_call_operand.vmem [shape: f32[1,384], index: 5, kind: input, shape index: {}]   ;;  %s1059_s6 = inlined_call_operand.hbm [shape: f32[1,8,384], index: 6, kind: output, shape index: {0}]   ;;  %s1060_s7 = inlined_call_operand.hbm [shape: f32[8,256], index: 7, kind: output, shape index: {1}]  }
   0x1   :  { %14 = vsyncpa [#allocation8], 0 }
   0x2   :  { %15 = vsyncpa [#allocation11], 0 }
   0x3   :  { %16 = vsyncpa [#allocation6], 0  ;;  %s34_s26 = sshll.u32 %s1054_s1, 4  ;;  %s35_s26 = int_to_ptr.hbm [resolvable:$true] %s34_s26 }
   0x4   :  { %17 = vsyncpa [#allocation15], 0  ;;  %s916_s27 = smov [#allocation7]   ;;  %s58_s8 = sshll.u32 %s1056_s3, 4  ;;  %s59_s8 = int_to_ptr.hbm [resolvable:$true] %s58_s8 }
   0x5   :  { %s36_s28 = sshll.u32 %s916_s27, 4  ;;  %s917_s9 = smov [#allocation10]   ;;  %s37_s28 = int_to_ptr.vmem [resolvable:$true] %s36_s28 }
   0x6   :  { %39 = dma.hbm_to_vmem [thread:$0]  %s35_s26, 256, %s37_s28, [#allocation8]  }
   0x7   :  { %s60_s10 = sshll.u32 %s917_s9, 4  ;;  %s23_s13 = sshll.u32 %s1053_s0, 4  ;;  %s61_s10 = int_to_ptr.vmem [resolvable:$true] %s60_s10  ;;  %s24_s13 = int_to_ptr.hbm [resolvable:$true] %s23_s13 }
   0x8   :  { %63 = dma.hbm_to_vmem [thread:$0]  %s59_s8, 64, %s61_s10, [#allocation11]  }
   0x9   :  { %s44_s15 = sshll.u32 %s1055_s2, 4  ;;  %s918_s16 = smov [#allocation4]   ;;  %s45_s15 = int_to_ptr.hbm [resolvable:$true] %s44_s15 }
   0xa   :  { %s25_s17 = sshll.u32 %s918_s16, 4  ;;  %s919_s3 = smov [#allocation9]   ;;  %s26_s17 = int_to_ptr.vmem [resolvable:$true] %s25_s17 }
   0xb   :  { %28 = dma.hbm_to_vmem [thread:$0]  %s24_s13, 128, %s26_s17, [#allocation5]  }
   0xc   :  { %s46_s18 = sshll.u32 %s919_s3, 4  ;;  %s920_s19 = smov 512   ;;  %s47_s18 = int_to_ptr.vmem [resolvable:$true] %s46_s18 }
   0xd   :  { %s921_s20 = smov 32   ;;  %s68_s22 = sshll.u32 %s1057_s4, 4  ;;  %s69_s22 = int_to_ptr.hbm [resolvable:$true] %s68_s22 }
   0xe   :  { %52 = dma.hbm_to_vmem [thread:$0]  %s45_s15, 16384, %s47_s18, [#allocation8], %s920_s19, %s920_s19, %s921_s20  }
   0xf   :  { %s922_s23 = smov [#allocation12]   ;;  %s923_s2 = smov 384  }
  0x10   :  { %s70_s24 = sshll.u32 %s922_s23, 4  ;;  %s924_s25 = smov 24   ;;  %s71_s24 = int_to_ptr.vmem [resolvable:$true] %s70_s24 }
  0x11   :  { %76 = dma.hbm_to_vmem [thread:$0]  %s69_s22, 6144, %s71_s24, [#allocation11], %s923_s2, %s923_s2, %s924_s25  }
  0x12   :  { %906 = dma.done.wait [#allocation5], 128  }
  0x13   :  { %907 = vsyncadd [#allocation5], 4294967168 }
  0x14   :  { %908 = dma.done.wait [#allocation8], 16640  }
  0x15   :  { %909 = vsyncadd [#allocation8], 4294950656 }
  0x16   :  { %910 = dma.done.wait [#allocation11], 6208  }
  0x17   :  { %911 = vsyncadd [#allocation11], 4294961088  ;;  %v197_v0 = vld [vmem:[#allocation9 + $0x1e8] sm:$0xff]  ;;  %v196_v3 = vld [vmem:[#allocation9 + $0x1e0] sm:$0xff]  ;;  %s685_s30 = sshll.u32 %s1060_s7, 4  ;;  %s926_s8 = smov [#allocation13]   ;;  %s686_s30 = int_to_ptr.hbm [resolvable:$true] %s685_s30 }
  0x18   :  { %v193_v1 = vld [vmem:[#allocation9 + $0x1c8] sm:$0xff]  ;;  %314 = vmatpush.msra.mxu2 %v197_v0  ;;  %274 = vmatpush.msra.mxu0 %v196_v3  ;;  %v192_v6 = vld [vmem:[#allocation9 + $0x1c0] sm:$0xff]  ;;  %v199_v61 = vld [vmem:[#allocation9 + $0x1f8] sm:$0xff]  ;;  %s672_s9 = sshll.u32 %s926_s8, 4  ;;  %s674_s12 = sshll.u32 %s1059_s6, 4  ;;  %s673_s9 = int_to_ptr.vmem [resolvable:$true] %s672_s9  ;;  %s675_s12 = int_to_ptr.hbm [resolvable:$true] %s674_s12 }
  0x19   :  { %v261_v2 = vld [vmem:[#allocation9 + $0x3e8] sm:$0xff]  ;;  %v260_v7 = vld [vmem:[#allocation9 + $0x3e0] sm:$0xff]  ;;  %v263_v0 = vld [vmem:[#allocation9 + $0x3f8] sm:$0xff] }
  0x1a   :  { %334 = vmatpush.msra.mxu3 %v261_v2  ;;  %v257_v4 = vld [vmem:[#allocation9 + $0x3c8] sm:$0xff]  ;;  %315 = vmatpush.msra.mxu2 %v193_v1  ;;  %v188_v9 = vld [vmem:[#allocation9 + $0x1a0] sm:$0xff]  ;;  %v195_v1 = vld [vmem:[#allocation9 + $0x1d8] sm:$0xff] }
  0x1b   :  { %v189_v5 = vld [vmem:[#allocation9 + $0x1a8] sm:$0xff]  ;;  %v256_v10 = vld [vmem:[#allocation9 + $0x3c0] sm:$0xff]  ;;  %275 = vmatpush.msra.mxu0 %v192_v6  ;;  %294 = vmatpush.msra.mxu1 %v260_v7  ;;  %v198_v2 = vld [vmem:[#allocation9 + $0x1f0] sm:$0xff] }
  0x1c   :  { %335 = vmatpush.msra.mxu3 %v257_v4  ;;  %v253_v8 = vld [vmem:[#allocation9 + $0x3a8] sm:$0xff]  ;;  %316 = vmatpush.msra.mxu2 %v189_v5  ;;  %v184_v13 = vld [vmem:[#allocation9 + $0x180] sm:$0xff]  ;;  %v259_v4 = vld [vmem:[#allocation9 + $0x3d8] sm:$0xff] }
  0x1d   :  { %v185_v11 = vld [vmem:[#allocation9 + $0x188] sm:$0xff]  ;;  %v252_v14 = vld [vmem:[#allocation9 + $0x3a0] sm:$0xff]  ;;  %276 = vmatpush.msra.mxu0 %v188_v9  ;;  %295 = vmatpush.msra.mxu1 %v256_v10  ;;  %v191_v5 = vld [vmem:[#allocation9 + $0x1b8] sm:$0xff] }
  0x1e   :  { %v249_v12 = vld [vmem:[#allocation9 + $0x388] sm:$0xff]  ;;  %336 = vmatpush.msra.mxu3 %v253_v8  ;;  %317 = vmatpush.msra.mxu2 %v185_v11  ;;  %v180_v17 = vld [vmem:[#allocation9 + $0x160] sm:$0xff]  ;;  %v194_v6 = vld [vmem:[#allocation9 + $0x1d0] sm:$0xff] }
  0x1f   :  { %v181_v15 = vld [vmem:[#allocation9 + $0x168] sm:$0xff]  ;;  %v248_v18 = vld [vmem:[#allocation9 + $0x380] sm:$0xff]  ;;  %277 = vmatpush.msra.mxu0 %v184_v13  ;;  %296 = vmatpush.msra.mxu1 %v252_v14  ;;  %v262_v7 = vld [vmem:[#allocation9 + $0x3f0] sm:$0xff] }
  0x20   :  { %v245_v16 = vld [vmem:[#allocation9 + $0x368] sm:$0xff]  ;;  %337 = vmatpush.msra.mxu3 %v249_v12  ;;  %318 = vmatpush.msra.mxu2 %v181_v15  ;;  %v176_v21 = vld [vmem:[#allocation9 + $0x140] sm:$0xff]  ;;  %v255_v8 = vld [vmem:[#allocation9 + $0x3b8] sm:$0xff] }
  0x21   :  { %v177_v19 = vld [vmem:[#allocation9 + $0x148] sm:$0xff]  ;;  %v244_v22 = vld [vmem:[#allocation9 + $0x360] sm:$0xff]  ;;  %278 = vmatpush.msra.mxu0 %v180_v17  ;;  %297 = vmatpush.msra.mxu1 %v248_v18  ;;  %v187_v9 = vld [vmem:[#allocation9 + $0x198] sm:$0xff] }
  0x22   :  { %v241_v20 = vld [vmem:[#allocation9 + $0x348] sm:$0xff]  ;;  %338 = vmatpush.msra.mxu3 %v245_v16  ;;  %319 = vmatpush.msra.mxu2 %v177_v19  ;;  %v172_v25 = vld [vmem:[#allocation9 + $0x120] sm:$0xff]  ;;  %v190_v10 = vld [vmem:[#allocation9 + $0x1b0] sm:$0xff] }
  0x23   :  { %v173_v23 = vld [vmem:[#allocation9 + $0x128] sm:$0xff]  ;;  %v240_v26 = vld [vmem:[#allocation9 + $0x340] sm:$0xff]  ;;  %279 = vmatpush.msra.mxu0 %v176_v21  ;;  %298 = vmatpush.msra.mxu1 %v244_v22  ;;  %v258_v12 = vld [vmem:[#allocation9 + $0x3d0] sm:$0xff] }
  0x24   :  { %v237_v24 = vld [vmem:[#allocation9 + $0x328] sm:$0xff]  ;;  %339 = vmatpush.msra.mxu3 %v241_v20  ;;  %320 = vmatpush.msra.mxu2 %v173_v23  ;;  %v168_v29 = vld [vmem:[#allocation9 + $0x100] sm:$0xff]  ;;  %v183_v13 = vld [vmem:[#allocation9 + $0x178] sm:$0xff] }
  0x25   :  { %v169_v27 = vld [vmem:[#allocation9 + $0x108] sm:$0xff]  ;;  %v236_v30 = vld [vmem:[#allocation9 + $0x320] sm:$0xff]  ;;  %280 = vmatpush.msra.mxu0 %v172_v25  ;;  %299 = vmatpush.msra.mxu1 %v240_v26  ;;  %v251_v14 = vld [vmem:[#allocation9 + $0x398] sm:$0xff] }
  0x26   :  { %v233_v28 = vld [vmem:[#allocation9 + $0x308] sm:$0xff]  ;;  %340 = vmatpush.msra.mxu3 %v237_v24  ;;  %321 = vmatpush.msra.mxu2 %v169_v27  ;;  %v164_v33 = vld [vmem:[#allocation9 + $0xe0] sm:$0xff]  ;;  %v984_v15 = vld [vmem:[#allocation7] sm:$0xff] }
  0x27   :  { %v165_v31 = vld [vmem:[#allocation9 + $0xe8] sm:$0xff]  ;;  %v232_v34 = vld [vmem:[#allocation9 + $0x300] sm:$0xff]  ;;  %281 = vmatpush.msra.mxu0 %v168_v29  ;;  %300 = vmatpush.msra.mxu1 %v236_v30  ;;  %v186_v16 = vld [vmem:[#allocation9 + $0x190] sm:$0xff] }
  0x28   :  { %v229_v32 = vld [vmem:[#allocation9 + $0x2e8] sm:$0xff]  ;;  %341 = vmatpush.msra.mxu3 %v233_v28  ;;  %322 = vmatpush.msra.mxu2 %v165_v31  ;;  %v160_v37 = vld [vmem:[#allocation9 + $0xc0] sm:$0xff]  ;;  %v254_v17 = vld [vmem:[#allocation9 + $0x3b0] sm:$0xff] }
  0x29   :  { %v161_v35 = vld [vmem:[#allocation9 + $0xc8] sm:$0xff]  ;;  %v228_v38 = vld [vmem:[#allocation9 + $0x2e0] sm:$0xff]  ;;  %282 = vmatpush.msra.mxu0 %v164_v33  ;;  %301 = vmatpush.msra.mxu1 %v232_v34  ;;  %v179_v18 = vld [vmem:[#allocation9 + $0x158] sm:$0xff] }
  0x2a   :  { %v225_v36 = vld [vmem:[#allocation9 + $0x2c8] sm:$0xff]  ;;  %342 = vmatpush.msra.mxu3 %v229_v32  ;;  %323 = vmatpush.msra.mxu2 %v161_v35  ;;  %v156_v41 = vld [vmem:[#allocation9 + $0xa0] sm:$0xff]  ;;  %v247_v19 = vld [vmem:[#allocation9 + $0x378] sm:$0xff] }
  0x2b   :  { %v157_v39 = vld [vmem:[#allocation9 + $0xa8] sm:$0xff]  ;;  %v224_v42 = vld [vmem:[#allocation9 + $0x2c0] sm:$0xff]  ;;  %283 = vmatpush.msra.mxu0 %v160_v37  ;;  %302 = vmatpush.msra.mxu1 %v228_v38  ;;  %v182_v20 = vld [vmem:[#allocation9 + $0x170] sm:$0xff] }
  0x2c   :  { %v221_v40 = vld [vmem:[#allocation9 + $0x2a8] sm:$0xff]  ;;  %343 = vmatpush.msra.mxu3 %v225_v36  ;;  %324 = vmatpush.msra.mxu2 %v157_v39  ;;  %v152_v45 = vld [vmem:[#allocation9 + $0x80] sm:$0xff]  ;;  %v250_v21 = vld [vmem:[#allocation9 + $0x390] sm:$0xff] }
  0x2d   :  { %v153_v43 = vld [vmem:[#allocation9 + $0x88] sm:$0xff]  ;;  %v220_v46 = vld [vmem:[#allocation9 + $0x2a0] sm:$0xff]  ;;  %284 = vmatpush.msra.mxu0 %v156_v41  ;;  %303 = vmatpush.msra.mxu1 %v224_v42  ;;  %v175_v22 = vld [vmem:[#allocation9 + $0x138] sm:$0xff] }
  0x2e   :  { %v217_v44 = vld [vmem:[#allocation9 + $0x288] sm:$0xff]  ;;  %344 = vmatpush.msra.mxu3 %v221_v40  ;;  %325 = vmatpush.msra.mxu2 %v153_v43  ;;  %v148_v49 = vld [vmem:[#allocation9 + $0x60] sm:$0xff]  ;;  %v243_v23 = vld [vmem:[#allocation9 + $0x358] sm:$0xff] }
  0x2f   :  { %v149_v47 = vld [vmem:[#allocation9 + $0x68] sm:$0xff]  ;;  %v216_v50 = vld [vmem:[#allocation9 + $0x280] sm:$0xff]  ;;  %285 = vmatpush.msra.mxu0 %v152_v45  ;;  %304 = vmatpush.msra.mxu1 %v220_v46  ;;  %v178_v24 = vld [vmem:[#allocation9 + $0x150] sm:$0xff] }
  0x30   :  { %v213_v48 = vld [vmem:[#allocation9 + $0x268] sm:$0xff]  ;;  %345 = vmatpush.msra.mxu3 %v217_v44  ;;  %326 = vmatpush.msra.mxu2 %v149_v47  ;;  %v144_v53 = vld [vmem:[#allocation9 + $0x40] sm:$0xff]  ;;  %v246_v25 = vld [vmem:[#allocation9 + $0x370] sm:$0xff] }
  0x31   :  { %v145_v51 = vld [vmem:[#allocation9 + $0x48] sm:$0xff]  ;;  %v212_v54 = vld [vmem:[#allocation9 + $0x260] sm:$0xff]  ;;  %286 = vmatpush.msra.mxu0 %v148_v49  ;;  %305 = vmatpush.msra.mxu1 %v216_v50  ;;  %v171_v26 = vld [vmem:[#allocation9 + $0x118] sm:$0xff] }
  0x32   :  { %v209_v52 = vld [vmem:[#allocation9 + $0x248] sm:$0xff]  ;;  %346 = vmatpush.msra.mxu3 %v213_v48  ;;  %327 = vmatpush.msra.mxu2 %v145_v51  ;;  %v140_v57 = vld [vmem:[#allocation9 + $0x20] sm:$0xff]  ;;  %v239_v27 = vld [vmem:[#allocation9 + $0x338] sm:$0xff] }
  0x33   :  { %v141_v55 = vld [vmem:[#allocation9 + $0x28] sm:$0xff]  ;;  %v208_v58 = vld [vmem:[#allocation9 + $0x240] sm:$0xff]  ;;  %287 = vmatpush.msra.mxu0 %v144_v53  ;;  %306 = vmatpush.msra.mxu1 %v212_v54  ;;  %v174_v28 = vld [vmem:[#allocation9 + $0x130] sm:$0xff] }
  0x34   :  { %v205_v56 = vld [vmem:[#allocation9 + $0x228] sm:$0xff]  ;;  %347 = vmatpush.msra.mxu3 %v209_v52  ;;  %328 = vmatpush.msra.mxu2 %v141_v55  ;;  %v136_v62 = vld [vmem:[#allocation9] sm:$0xff]  ;;  %v242_v29 = vld [vmem:[#allocation9 + $0x350] sm:$0xff] }
  0x35   :  { %v137_v59 = vld [vmem:[#allocation9 + $0x8] sm:$0xff]  ;;  %288 = vmatpush.msra.mxu0 %v140_v57  ;;  %307 = vmatpush.msra.mxu1 %v208_v58  ;;  %v204_v63 = vld [vmem:[#allocation9 + $0x220] sm:$0xff]  ;;  %v167_v30 = vld [vmem:[#allocation9 + $0xf8] sm:$0xff] }
  0x36   :  { %v201_v60 = vld [vmem:[#allocation9 + $0x208] sm:$0xff]  ;;  %348 = vmatpush.msra.mxu3 %v205_v56  ;;  %329 = vmatpush.msra.mxu2 %v137_v59  ;;  %v200_v3 = vld [vmem:[#allocation9 + $0x200] sm:$0xff]  ;;  %v235_v31 = vld [vmem:[#allocation9 + $0x318] sm:$0xff] }
  0x37   :  { %289 = vmatpush.msra.mxu0 %v136_v62  ;;  %308 = vmatpush.msra.mxu1 %v204_v63  ;;  %v982_v11 = vld [vmem:[#allocation4] sm:$0xff]  ;;  %v170_v32 = vld [vmem:[#allocation9 + $0x110] sm:$0xff]  ;;  %v163_v34 = vld [vmem:[#allocation9 + $0xd8] sm:$0xff] }
  0x38   :  { %349 = vmatpush.msra.mxu3 %v201_v60  ;;  %394 = vmatpush.msrb.mxu2 %v199_v61  ;;  %v238_v33 = vld [vmem:[#allocation9 + $0x330] sm:$0xff]  ;;  %v231_v35 = vld [vmem:[#allocation9 + $0x2f8] sm:$0xff] }
  0x39   :  { %354 = vmatpush.msrb.mxu0 %v198_v2  ;;  %309 = vmatpush.msra.mxu1 %v200_v3  ;;  %v166_v36 = vld [vmem:[#allocation9 + $0xf0] sm:$0xff]  ;;  %v159_v38 = vld [vmem:[#allocation9 + $0xb8] sm:$0xff]  ;;  %v994_v2 = vld [vmem:[#allocation10] sm:$0xf] }
  0x3a   :  { %414 = vmatpush.msrb.mxu3 %v263_v0  ;;  %395 = vmatpush.msrb.mxu2 %v195_v1  ;;  %v234_v37 = vld [vmem:[#allocation9 + $0x310] sm:$0xff]  ;;  %v227_v39 = vld [vmem:[#allocation9 + $0x2d8] sm:$0xff]  ;;  %v266_v3 = vperm.slane %v994_v2, 0 }
  0x3b   :  { %355 = vmatpush.msrb.mxu0 %v194_v6  ;;  %374 = vmatpush.msrb.mxu1 %v262_v7  ;;  %v162_v40 = vld [vmem:[#allocation9 + $0xd0] sm:$0xff]  ;;  %v155_v42 = vld [vmem:[#allocation9 + $0x98] sm:$0xff] }
  0x3c   :  { %415 = vmatpush.msrb.mxu3 %v259_v4  ;;  %396 = vmatpush.msrb.mxu2 %v191_v5  ;;  %v230_v41 = vld [vmem:[#allocation9 + $0x2f0] sm:$0xff]  ;;  %v223_v43 = vld [vmem:[#allocation9 + $0x2b8] sm:$0xff]  ;;  %v267_v4 = vperm.slane %v994_v2, 1 }
  0x3d   :  { %356 = vmatpush.msrb.mxu0 %v190_v10  ;;  %330 = vmatmul.f32.vlgmr.msra.gmra.mxu2 %v982_v11  ;;  %v158_v44 = vld [vmem:[#allocation9 + $0xb0] sm:$0xff]  ;;  %v151_v46 = vld [vmem:[#allocation9 + $0x78] sm:$0xff]  ;;  %v544_v10 = vld [vmem:[#allocation12 + $0x160] sm:$0xff] }
  0x3e   :  { %416 = vmatpush.msrb.mxu3 %v255_v8  ;;  %397 = vmatpush.msrb.mxu2 %v187_v9  ;;  %v226_v45 = vld [vmem:[#allocation9 + $0x2d0] sm:$0xff]  ;;  %v219_v47 = vld [vmem:[#allocation9 + $0x298] sm:$0xff] }
  0x3f   :  { %375 = vmatpush.msrb.mxu1 %v258_v12  ;;  %350 = vmatmul.f32.vlgmr.msra.gmra.mxu3 %v984_v15  ;;  %v154_v48 = vld [vmem:[#allocation9 + $0x90] sm:$0xff]  ;;  %v147_v50 = vld [vmem:[#allocation9 + $0x58] sm:$0xff] }
  0x40   :  { %398 = vmatpush.msrb.mxu2 %v183_v13  ;;  %417 = vmatpush.msrb.mxu3 %v251_v14  ;;  %v222_v49 = vld [vmem:[#allocation9 + $0x2b0] sm:$0xff]  ;;  %v215_v51 = vld [vmem:[#allocation9 + $0x278] sm:$0xff] }
  0x41   :  { %357 = vmatpush.msrb.mxu0 %v186_v16  ;;  %376 = vmatpush.msrb.mxu1 %v254_v17  ;;  %v150_v52 = vld [vmem:[#allocation9 + $0x70] sm:$0xff]  ;;  %v143_v54 = vld [vmem:[#allocation9 + $0x38] sm:$0xff]  ;;  %v540_v16 = vld [vmem:[#allocation12 + $0x140] sm:$0xff] }
  0x42   :  { %399 = vmatpush.msrb.mxu2 %v179_v18  ;;  %418 = vmatpush.msrb.mxu3 %v247_v19  ;;  %v218_v53 = vld [vmem:[#allocation9 + $0x290] sm:$0xff]  ;;  %v211_v55 = vld [vmem:[#allocation9 + $0x258] sm:$0xff] }
  0x43   :  { %358 = vmatpush.msrb.mxu0 %v182_v20  ;;  %377 = vmatpush.msrb.mxu1 %v250_v21  ;;  %v146_v56 = vld [vmem:[#allocation9 + $0x50] sm:$0xff]  ;;  %v139_v58 = vld [vmem:[#allocation9 + $0x18] sm:$0xff]  ;;  %v536_v21 = vld [vmem:[#allocation12 + $0x120] sm:$0xff] }
  0x44   :  { %400 = vmatpush.msrb.mxu2 %v175_v22  ;;  %419 = vmatpush.msrb.mxu3 %v243_v23  ;;  %v214_v57 = vld [vmem:[#allocation9 + $0x270] sm:$0xff]  ;;  %v207_v59 = vld [vmem:[#allocation9 + $0x238] sm:$0xff] }
  0x45   :  { %290 = vmatmul.f32.vlgmr.msra.gmra.mxu0 %v982_v11  ;;  %378 = vmatpush.msrb.mxu1 %v246_v25  ;;  %v142_v60 = vld [vmem:[#allocation9 + $0x30] sm:$0xff]  ;;  %v203_v62 = vld [vmem:[#allocation9 + $0x218] sm:$0xff] }
  0x46   :  { %359 = vmatpush.msrb.mxu0 %v178_v24  ;;  %401 = vmatpush.msrb.mxu2 %v171_v26  ;;  %v210_v61 = vld [vmem:[#allocation9 + $0x250] sm:$0xff]  ;;  %v547_v7 = vld [vmem:[#allocation12 + $0x178] sm:$0xff] }
  0x47   :  { %420 = vmatpush.msrb.mxu3 %v239_v27  ;;  %310 = vmatmul.f32.vlgmr.msra.gmra.mxu1 %v984_v15  ;;  %v138_v63 = vld [vmem:[#allocation9 + $0x10] sm:$0xff]  ;;  %v543_v9 = vld [vmem:[#allocation12 + $0x158] sm:$0xff] }
  0x48   :  { %360 = vmatpush.msrb.mxu0 %v174_v28  ;;  %379 = vmatpush.msrb.mxu1 %v242_v29  ;;  %v206_v0 = vld [vmem:[#allocation9 + $0x230] sm:$0xff]  ;;  %v535_v28 = vld [vmem:[#allocation12 + $0x118] sm:$0xff] }
  0x49   :  { %402 = vmatpush.msrb.mxu2 %v167_v30  ;;  %421 = vmatpush.msrb.mxu3 %v235_v31  ;;  %v202_v1 = vld [vmem:[#allocation9 + $0x210] sm:$0xff]  ;;  %v531_v31 = vld [vmem:[#allocation12 + $0xf8] sm:$0xff] }
  0x4a   :  { %361 = vmatpush.msrb.mxu0 %v170_v32  ;;  %380 = vmatpush.msrb.mxu1 %v238_v33  ;;  %v545_v5 = vld [vmem:[#allocation12 + $0x168] sm:$0xff]  ;;  %v546_v6 = vld [vmem:[#allocation12 + $0x170] sm:$0xff]  ;;  %v532_v32 = vld [vmem:[#allocation12 + $0x100] sm:$0xff] }
  0x4b   :  { %403 = vmatpush.msrb.mxu2 %v163_v34  ;;  %422 = vmatpush.msrb.mxu3 %v231_v35  ;;  %v542_v8 = vld [vmem:[#allocation12 + $0x150] sm:$0xff]  ;;  %v541_v17 = vld [vmem:[#allocation12 + $0x148] sm:$0xff]  ;;  %v527_v33 = vld [vmem:[#allocation12 + $0xd8] sm:$0xff] }
  0x4c   :  { %362 = vmatpush.msrb.mxu0 %v166_v36  ;;  %381 = vmatpush.msrb.mxu1 %v234_v37  ;;  %v537_v22 = vld [vmem:[#allocation12 + $0x128] sm:$0xff]  ;;  %v538_v23 = vld [vmem:[#allocation12 + $0x130] sm:$0xff]  ;;  %v528_v34 = vld [vmem:[#allocation12 + $0xe0] sm:$0xff] }
  0x4d   :  { %404 = vmatpush.msrb.mxu2 %v159_v38  ;;  %423 = vmatpush.msrb.mxu3 %v227_v39  ;;  %v533_v26 = vld [vmem:[#allocation12 + $0x108] sm:$0xff]  ;;  %v534_v27 = vld [vmem:[#allocation12 + $0x110] sm:$0xff]  ;;  %v524_v36 = vld [vmem:[#allocation12 + $0xc0] sm:$0xff] }
  0x4e   :  { %363 = vmatpush.msrb.mxu0 %v162_v40  ;;  %382 = vmatpush.msrb.mxu1 %v230_v41  ;;  %v530_v30 = vld [vmem:[#allocation12 + $0xf0] sm:$0xff]  ;;  %v529_v35 = vld [vmem:[#allocation12 + $0xe8] sm:$0xff] }
  0x4f   :  { %405 = vmatpush.msrb.mxu2 %v155_v42  ;;  %424 = vmatpush.msrb.mxu3 %v223_v43  ;;  %v525_v37 = vld [vmem:[#allocation12 + $0xc8] sm:$0xff]  ;;  %v526_v38 = vld [vmem:[#allocation12 + $0xd0] sm:$0xff]  ;;  %v523_v42 = vld [vmem:[#allocation12 + $0xb8] sm:$0xff] }
  0x50   :  { %364 = vmatpush.msrb.mxu0 %v158_v44  ;;  %383 = vmatpush.msrb.mxu1 %v226_v45  ;;  %v521_v40 = vld [vmem:[#allocation12 + $0xa8] sm:$0xff]  ;;  %v522_v41 = vld [vmem:[#allocation12 + $0xb0] sm:$0xff] }
  0x51   :  { %406 = vmatpush.msrb.mxu2 %v151_v46  ;;  %425 = vmatpush.msrb.mxu3 %v219_v47  ;;  %v518_v46 = vld [vmem:[#allocation12 + $0x90] sm:$0xff]  ;;  %v519_v47 = vld [vmem:[#allocation12 + $0x98] sm:$0xff] }
  0x52   :  { %365 = vmatpush.msrb.mxu0 %v154_v48  ;;  %384 = vmatpush.msrb.mxu1 %v222_v49  ;;  %v520_v48 = vld [vmem:[#allocation12 + $0xa0] sm:$0xff]  ;;  %v515_v49 = vld [vmem:[#allocation12 + $0x78] sm:$0xff] }
  0x53   :  { %407 = vmatpush.msrb.mxu2 %v147_v50  ;;  %426 = vmatpush.msrb.mxu3 %v215_v51  ;;  %v516_v50 = vld [vmem:[#allocation12 + $0x80] sm:$0xff]  ;;  %v517_v51 = vld [vmem:[#allocation12 + $0x88] sm:$0xff] }
  0x54   :  { %366 = vmatpush.msrb.mxu0 %v150_v52  ;;  %385 = vmatpush.msrb.mxu1 %v218_v53  ;;  %v512_v52 = vld [vmem:[#allocation12 + $0x60] sm:$0xff]  ;;  %v513_v53 = vld [vmem:[#allocation12 + $0x68] sm:$0xff] }
  0x55   :  { %408 = vmatpush.msrb.mxu2 %v143_v54  ;;  %427 = vmatpush.msrb.mxu3 %v211_v55  ;;  %v514_v54 = vld [vmem:[#allocation12 + $0x70] sm:$0xff]  ;;  %v268_v55 = vperm.slane %v994_v2, 2 }
  0x56   :  { %367 = vmatpush.msrb.mxu0 %v146_v56  ;;  %386 = vmatpush.msrb.mxu1 %v214_v57  ;;  %v509_v56 = vld [vmem:[#allocation12 + $0x48] sm:$0xff]  ;;  %v510_v57 = vld [vmem:[#allocation12 + $0x50] sm:$0xff] }
  0x57   :  { %409 = vmatpush.msrb.mxu2 %v139_v58  ;;  %428 = vmatpush.msrb.mxu3 %v207_v59  ;;  %v511_v58 = vld [vmem:[#allocation12 + $0x58] sm:$0xff]  ;;  %v506_v59 = vld [vmem:[#allocation12 + $0x30] sm:$0xff] }
  0x58   :  { %368 = vmatpush.msrb.mxu0 %v142_v60  ;;  %387 = vmatpush.msrb.mxu1 %v210_v61  ;;  %v507_v60 = vld [vmem:[#allocation12 + $0x38] sm:$0xff] }
  0x59   :  { %410 = vmatmul.f32.vlgmr.msrb.gmra.mxu2 %v982_v11  ;;  %429 = vmatpush.msrb.mxu3 %v203_v62  ;;  %v508_v62 = vld [vmem:[#allocation12 + $0x40] sm:$0xff] }
  0x5a   :  { %369 = vmatpush.msrb.mxu0 %v138_v63  ;;  %388 = vmatpush.msrb.mxu1 %v206_v0 }
  0x5b   :  { %430 = vmatmul.f32.vlgmr.msrb.gmra.mxu3 %v984_v15  ;;  %370 = vmatmul.f32.vlgmr.msrb.gmra.mxu0 %v982_v11 }
  0x5c   :  { %389 = vmatpush.msrb.mxu1 %v202_v1  ;;  %556 = vmatpush.msra.mxu0 %v545_v5  ;;  %v504_v5 = vld [vmem:[#allocation12 + $0x20] sm:$0xff] }
  0x5d   :  { %390 = vmatmul.f32.vlgmr.msrb.gmra.mxu1 %v984_v15  ;;  %596 = vmatpush.msra.mxu2 %v547_v7  ;;  %v539_v15 = vld [vmem:[#allocation12 + $0x138] sm:$0xff] }
  0x5e   :  { %576 = vmatpush.msra.mxu1 %v546_v6  ;;  %557 = vmatpush.msra.mxu0 %v542_v8 }
  0x5f   :  { %597 = vmatpush.msra.mxu2 %v544_v10  ;;  %v505_v10 = vld [vmem:[#allocation12 + $0x28] sm:$0xff] }
  0x60   :  { %577 = vmatpush.msra.mxu1 %v543_v9  ;;  %558 = vmatpush.msra.mxu0 %v539_v15 }
  0x61   :  { %598 = vmatpush.msra.mxu2 %v541_v17 }
  0x62   :  { %578 = vmatpush.msra.mxu1 %v540_v16  ;;  %559 = vmatpush.msra.mxu0 %v536_v21 }
  0x63   :  { %599 = vmatpush.msra.mxu2 %v538_v23 }
  0x64   :  { %579 = vmatpush.msra.mxu1 %v537_v22  ;;  %560 = vmatpush.msra.mxu0 %v533_v26 }
  0x65   :  { %600 = vmatpush.msra.mxu2 %v535_v28 }
  0x66   :  { %580 = vmatpush.msra.mxu1 %v534_v27  ;;  %561 = vmatpush.msra.mxu0 %v530_v30 }
  0x67   :  { %601 = vmatpush.msra.mxu2 %v532_v32 }
  0x68   :  { %581 = vmatpush.msra.mxu1 %v531_v31  ;;  %562 = vmatpush.msra.mxu0 %v527_v33 }
  0x69   :  { %602 = vmatpush.msra.mxu2 %v529_v35 }
  0x6a   :  { %582 = vmatpush.msra.mxu1 %v528_v34  ;;  %563 = vmatpush.msra.mxu0 %v524_v36 }
  0x6b   :  { %603 = vmatpush.msra.mxu2 %v526_v38 }
  0x6c   :  { %583 = vmatpush.msra.mxu1 %v525_v37  ;;  %564 = vmatpush.msra.mxu0 %v521_v40 }
  0x6d   :  { %604 = vmatpush.msra.mxu2 %v523_v42 }
  0x6e   :  { %584 = vmatpush.msra.mxu1 %v522_v41  ;;  %565 = vmatpush.msra.mxu0 %v518_v46 }
  0x6f   :  { %605 = vmatpush.msra.mxu2 %v520_v48 }
  0x70   :  { %585 = vmatpush.msra.mxu1 %v519_v47  ;;  %566 = vmatpush.msra.mxu0 %v515_v49 }
  0x71   :  { %606 = vmatpush.msra.mxu2 %v517_v51 }
  0x72   :  { %586 = vmatpush.msra.mxu1 %v516_v50  ;;  %567 = vmatpush.msra.mxu0 %v512_v52 }
  0x73   :  { %607 = vmatpush.msra.mxu2 %v514_v54  ;;  %v107_v54 = vlaneseq }
  0x74   :  { %587 = vmatpush.msra.mxu1 %v513_v53  ;;  %568 = vmatpush.msra.mxu0 %v509_v56  ;;  %v548_v56 = vld [vmem:[%s1058_s5] sm:$0x7]  ;;  %s925_s5 = smov [#allocation14]  }
  0x75   :  { %608 = vmatpush.msra.mxu2 %v511_v58  ;;  %v550_v58 = vperm.slane %v548_v56, 0  ;;  %s683_s27 = sshll.u32 %s925_s5, 4  ;;  %s684_s27 = int_to_ptr.vmem [resolvable:$true] %s683_s27 }
  0x76   :  { %588 = vmatpush.msra.mxu1 %v510_v57  ;;  %569 = vmatpush.msra.mxu0 %v506_v59  ;;  %v551_v59 = vperm.slane %v548_v56, 1 }
  0x77   :  { %609 = vmatpush.msra.mxu2 %v508_v62 }
  0x78   :  { %589 = vmatpush.msra.mxu1 %v507_v60 }
  0x79   :  { %610 = vmatpush.msra.mxu2 %v505_v10 }
  0x7a   :  { %590 = vmatpush.msra.mxu1 %v504_v5 }
  0xc0   :  { %v331_v11 = vpop.f32.mrf.mxu2 }
  0xc1   :  { %v332_v14 = vadd.f32 %v331_v11, %v267_v4  ;;  %v503_v4 = vld [vmem:[#allocation12 + $0x18] sm:$0xff] }
  0xc2   :  { %v291_v12 = vpop.f32.mrf.mxu0  ;;  %v351_v18 = vpop.f32.mrf.mxu3  ;;  %570 = vmatpush.msra.mxu0 %v503_v4  ;;  %v552_v4 = vperm.slane %v548_v56, 2 }
  0xc3   :  { %v292_v13 = vadd.f32 %v291_v12, %v266_v3  ;;  %v352_v20 = vadd.f32 %v351_v18, %v332_v14  ;;  %v269_v3 = vperm.slane %v994_v2, 3  ;;  %v501_v14 = vld [vmem:[#allocation12 + $0x8] sm:$0xff] }
  0xc4   :  { %v311_v19 = vpop.f32.mrf.mxu1  ;;  %591 = vmatpush.msra.mxu1 %v501_v14 }
  0xc5   :  { %v312_v24 = vadd.f32 %v311_v19, %v292_v13  ;;  %v703_v25 = vmul.f32 -1.442695, %v352_v20  ;;  %v500_v13 = vld [vmem:[#allocation12] sm:$0xff]  ;;  %v502_v19 = vld [vmem:[#allocation12 + $0x10] sm:$0xff] }
  0xc6   :  { %571 = vmatpush.msra.mxu0 %v500_v13  ;;  %611 = vmatpush.msra.mxu2 %v502_v19 }
  0xc7   :  { %v702_v29 = vmul.f32 -1.442695, %v312_v24  ;;  %716 = vpow2.f32 %v703_v25 }
  0xc9   :  { %718 = vpow2.f32 %v702_v29  ;;  %v105_v29 = vld [vmem:[#allocation7 + $0x8] sm:$0xff] }
  0xcd   :  { %v717_v39 = vpop.eup %716 }
  0xce   :  { %v998_v44 = vadd.f32 1.0, %v717_v39 }
  0xcf   :  { %v719_v43 = vpop.eup %718 }
  0xd0   :  { %v1000_v45 = vadd.f32 1.0, %v719_v43  ;;  %720 = vrcp.f32 %v998_v44  ;;  %vm462_vm0 = vweird.f32 %v998_v44  ;;  %v468_v7 = vand.u32 2147483648, %v998_v44 }
  0xd1   :  { %v466_v9 = vand.u32 2147483647, %v998_v44 }
  0xd2   :  { %722 = vrcp.f32 %v1000_v45  ;;  %vm443_vm2 = vweird.f32 %v1000_v45  ;;  %v449_v2 = vand.u32 2147483648, %v1000_v45  ;;  %v447_v17 = vand.u32 2147483647, %v1000_v45 }
  0xd3   :  { %v469_v23 = vor.u32 1.1754944e-38, %v468_v7  ;;  %vm467_vm6 = vcmp.eq.f32.partialorder %v466_v9, 8.507059e+37 }
  0xd4   :  { %v450_v26 = vor.u32 1.1754944e-38, %v449_v2  ;;  %vm448_vm7 = vcmp.eq.f32.partialorder %v447_v17, 8.507059e+37 }
  0xd6   :  { %v721_v61 = vpop.eup %720 }
  0xd7   :  { %v458_v0 = vmul.f32 %v721_v61, %v998_v44  ;;  %vm463_vm1 = vweird.f32 %v721_v61 }
  0xd8   :  { %v723_v63 = vpop.eup %722  ;;  %v371_v1 = vpop.f32.mrf.mxu0  ;;  %vm1017_vm4 = vmor %vm462_vm0, %vm463_vm1 }
  0xd9   :  { %v439_v6 = vmul.f32 %v723_v63, %v1000_v45  ;;  %v372_v8 = vadd.f32 %v371_v1, %v268_v55  ;;  %v459_v12 = vsub.f32 1.0, %v458_v0  ;;  %vm444_vm3 = vweird.f32 %v723_v63 }
  0xda   :  { %v391_v11 = vpop.f32.mrf.mxu1  ;;  %vm445_vm5 = vmor %vm443_vm2, %vm444_vm3  ;;  %v108_v55 = vand.u32 127, %v107_v54 }
  0xdb   :  { %v440_v15 = vsub.f32 1.0, %v439_v6  ;;  %v392_v16 = vadd.f32 %v391_v11, %v372_v8  ;;  %v460_v20 = vmul.f32 %v721_v61, %v459_v12 }
  0xdc   :  { %v411_v18 = vpop.f32.mrf.mxu2  ;;  %v109_v57 = vadd.s32 128, %v108_v55 }
  0xdd   :  { %v412_v21 = vadd.f32 %v411_v18, %v269_v3  ;;  %v441_v24 = vmul.f32 %v723_v63, %v440_v15  ;;  %724 = vtanh.f32 %v392_v16  ;;  %v461_v27 = vadd.f32 %v721_v61, %v460_v20 }
  0xde   :  { %v431_v25 = vpop.f32.mrf.mxu3  ;;  %vm112_vm12 = vcmp.ge.s32.totalorder %v109_v57, 160 }
  0xdf   :  { %v432_v28 = vadd.f32 %v431_v25, %v412_v21  ;;  %v442_v30 = vadd.f32 %v723_v63, %v441_v24  ;;  %v465_v31 = vsel %vm1017_vm4, %v721_v61, %v461_v27  ;;  %v110_v61 = vadd.s32 256, %v108_v55 }
  0xe0   :  { %v470_v34 = vsel %vm467_vm6, %v469_v23, %v465_v31 }
  0xe1   :  { %v704_v32 = vmul.f32 -1.442695, %v432_v28  ;;  %v446_v33 = vsel %vm445_vm5, %v723_v63, %v442_v30  ;;  %v493_v36 = vmul.f32 %v470_v34, %v105_v29  ;;  %vm122_vm13 = vcmp.ge.s32.totalorder %v110_v61, 320 }
  0xe2   :  { %v451_v35 = vsel %vm448_vm7, %v450_v26, %v446_v33  ;;  %vm125_vm14 = vcmp.lt.s32.totalorder %v110_v61, 325  ;;  %vm116_vm0 = vcmp.lt.s32.totalorder %v110_v61, 320 }
  0xe3   :  { %726 = vpow2.f32 %v704_v32  ;;  %v725_v37 = vpop.eup %724  ;;  %vm1030_vm15 = vmand %vm122_vm13, %vm125_vm14 }
  0xe4   :  { %v494_v38 = vmul.f32 %v725_v37, %v451_v35  ;;  %vm131_vm1 = vmor %vm116_vm0, %vm1030_vm15 }
  0xe6   :  { %v495_v39 = vadd.f32 %v494_v38, %v493_v36 }
  0xe8   :  { %666 = vst [vmem:[#allocation14 + $0x8] sm:$0xff] %v495_v39 }
  0xe9   :  { %v727_v40 = vpop.eup %726 }
  0xea   :  { %v476_v41 = vadd.f32 1.0, %v727_v40 }
  0xec   :  { %728 = vrcp.f32 %v476_v41  ;;  %v488_v45 = vand.u32 2147483648, %v476_v41  ;;  %v486_v47 = vand.u32 2147483647, %v476_v41  ;;  %vm482_vm9 = vweird.f32 %v476_v41 }
  0xed   :  { %730 = vtanh.f32 %v495_v39 }
  0xee   :  { %v489_v49 = vor.u32 1.1754944e-38, %v488_v45  ;;  %vm487_vm11 = vcmp.eq.f32.partialorder %v486_v47, 8.507059e+37 }
  0xf2   :  { %v729_v42 = vpop.eup %728 }
  0xf3   :  { %v478_v43 = vmul.f32 %v729_v42, %v476_v41  ;;  %vm483_vm8 = vweird.f32 %v729_v42  ;;  %v731_v51 = vpop.eup %730 }
  0xf4   :  { %vm484_vm10 = vmor %vm482_vm9, %vm483_vm8 }
  0xf5   :  { %v479_v44 = vsub.f32 1.0, %v478_v43 }
  0xf7   :  { %v480_v46 = vmul.f32 %v729_v42, %v479_v44 }
  0xf9   :  { %v481_v48 = vadd.f32 %v729_v42, %v480_v46 }
  0xfb   :  { %v485_v50 = vsel %vm484_vm10, %v729_v42, %v481_v48 }
  0xfc   :  { %v490_v52 = vsel %vm487_vm11, %v489_v49, %v485_v50 }
  0xfd   :  { %v497_v53 = vmul.f32 %v731_v51, %v490_v52 }
  0xff   :  { %572 = vmatmul.f32.vlgmr.msra.gmra.mxu0 %v497_v53  ;;  %664 = vst [vmem:[#allocation14] sm:$0xff] %v497_v53  ;;  %592 = vmatmul.f32.vlgmr.msra.gmra.mxu1 %v497_v53 }
 0x100   :  { %612 = vmatmul.f32.vlgmr.msra.gmra.mxu2 %v497_v53  ;;  %688 = dma.vmem_to_hbm [thread:$0]  %s684_s27, 256, %s686_s30, [#allocation15]  }
 0x17c   :  { %v573_v60 = vpop.f32.mrf.mxu0  ;;  %v593_v62 = vpop.f32.mrf.mxu1 }
 0x17d   :  { %v574_v63 = vadd.f32 %v573_v60, %v550_v58  ;;  %v594_v0 = vadd.f32 %v593_v62, %v551_v59 }
 0x17f   :  { %657 = vst [vmem:[#allocation13] sm:$0xff] %v574_v63  ;;  %v630_v1 = vsel %vm112_vm12, %v594_v0, 0.0 }
 0x180   :  { %v634_v3 = vmul.f32 1.442695, %v630_v1 }
 0x182   :  { %732 = vpow2.f32 %v634_v3 }
 0x183   :  { %v613_v5 = vpop.f32.mrf.mxu2 }
 0x184   :  { %v614_v7 = vadd.f32 %v613_v5, %v552_v4 }
 0x186   :  { %v618_v8 = vsel %vm1030_vm15, %v614_v7, -1e+30 }
 0x187   :  { %v620_v9 = vmax.f32 %v618_v8, -1e+30 }
 0x188   :  { %v733_v10 = vpop.eup %732 }
 0x189   :  { %v649_v12 = vsel %vm112_vm12, %v733_v10, %v594_v0  ;;  %621 = vmax.xlane.f32.xlu0 %v620_v9 }
 0x18a   :  { %658 = vst [vmem:[#allocation13 + $0x8] sm:$0xff] %v649_v12 }
 0x1fc   :  { %v622_v11 = vpop.xlane.xlu0 %621 }
 0x1fd   :  { %v625_v2 = vsel %vm1030_vm15, %v622_v11, 0.0 }
 0x1fe   :  { %v628_v13 = vsub.f32 %v614_v7, %v625_v2 }
 0x200   :  { %v631_v14 = vsel %vm131_vm1, %v628_v13, 0.0 }
 0x201   :  { %v636_v15 = vmul.f32 1.442695, %v631_v14 }
 0x203   :  { %734 = vpow2.f32 %v636_v15 }
 0x209   :  { %v735_v16 = vpop.eup %734 }
 0x20a   :  { %v640_v17 = vsel %vm1030_vm15, %v735_v16, 0.0  ;;  %v650_v23 = vsel %vm116_vm0, %v735_v16, %v614_v7 }
 0x20b   :  { %643 = vadd.xlane.f32.xlu0 %v640_v17 }
 0x27e   :  { %v644_v18 = vpop.xlane.xlu0 %643 }
 0x27f   :  { %736 = vlog2.f32 %v644_v18 }
 0x285   :  { %v737_v19 = vpop.eup %736 }
 0x286   :  { %v646_v20 = vmul.f32 0.6931472, %v737_v19 }
 0x288   :  { %v647_v21 = vadd.f32 %v646_v20, %v622_v11 }
 0x28a   :  { %v653_v22 = vsub.f32 %v614_v7, %v647_v21 }
 0x28c   :  { %v656_v24 = vsel %vm1030_vm15, %v653_v22, %v650_v23 }
 0x28d   :  { %659 = vst [vmem:[#allocation13 + $0x10] sm:$0xff] %v656_v24 }
 0x28e   :  { %677 = dma.vmem_to_hbm [thread:$0]  %s673_s9, 384, %s675_s12, [#allocation6]  }
 0x28f   :  { %912 = dma.done.wait [#allocation6], 384  }
 0x290   :  { %913 = vsyncadd [#allocation6], 4294966912 }
 0x291   :  { %914 = dma.done.wait [#allocation15], 256  }
 0x292   :  { %915 = vsyncadd [#allocation15], 4294967040 }
 0x293   :  { %697 = vsyncpa [#allocation5], 1 }
 0x294   :  { %698 = vsyncpa [#allocation8], 1 }
 0x295   :  { %699 = vsyncpa [#allocation11], 1 }
 0x296   :  { %700 = vsyncpa [#allocation6], 1 }
 0x297   :  { %701 = vsyncpa [#allocation15], 1 }

</bundles_post_ra>
